<compile_context>
chip_gen: v5e
topology: v5e:2x2
jax: 0.10.0
libtpu: 0.0.40
codegen_flags: <defaults>
</compile_context>

<pallas_src>
import numpy as np
import jax
import jax.numpy as jnp
from jax.experimental import pallas as pl
from jax.experimental.pallas import tpu as pltpu


# ----------------------------------------------------------------------------
# Pallas kernel: fused 1x1-conv chain + quaternion modulus + sigmoid gate.
#   g_ref:  (Cg, thw)    x_ref:  (Cx, thw)
#   wg_ref: (Co, Cg)     wx_ref: (Co, Cx)     wf_ref: (4, Co)
#   o_ref:  (Cx, thw)
# ----------------------------------------------------------------------------
def qatt_kernel(g_ref, x_ref, wg_ref, wx_ref, wf_ref, o_ref):
    g = g_ref[...]
    x = x_ref[...]

    # 1x1 quaternion convs == W @ X matmuls over the channel dim (MXU),
    # pixels stay on the lane axis throughout.
    g1 = jnp.dot(wg_ref[...], g, preferred_element_type=jnp.float32)
    x1 = jnp.dot(wx_ref[...], x, preferred_element_type=jnp.float32)
    net = jnp.maximum(g1 + x1, 0.0)                                   # (Co, thw)
    f = jnp.dot(wf_ref[...], net, preferred_element_type=jnp.float32)  # (4, thw)

    # get_modulus(net, vector_form=True): sqrt(r^2+i^2+j^2+k^2) over the 4
    # quaternion output channels.  Explicit 4-term sum of squares -> pure VPU.
    sq = f * f
    mod = jnp.sqrt(sq[0:1, :] + sq[1:2, :] + sq[2:3, :] + sq[3:4, :])  # (1, thw)
    att = jax.nn.sigmoid(mod)                                          # EUP exp

    o_ref[...] = (att * x.astype(jnp.float32)).astype(o_ref.dtype)


# ----------------------------------------------------------------------------
# Quaternion weight construction (Hamilton product block matrix), deterministic
# ----------------------------------------------------------------------------
def make_quaternion_weight(key, out_ch, in_ch):
    assert out_ch % 4 == 0 and in_ch % 4 == 0
    o4, i4 = out_ch // 4, in_ch // 4
    kr, ki, kj, kk = jax.random.split(key, 4)
    scale = 1.0 / np.sqrt(in_ch)
    r = jax.random.normal(kr, (o4, i4), jnp.float32) * scale
    i = jax.random.normal(ki, (o4, i4), jnp.float32) * scale
    j = jax.random.normal(kj, (o4, i4), jnp.float32) * scale
    k = jax.random.normal(kk, (o4, i4), jnp.float32) * scale
    row_r = jnp.concatenate([r, -i, -j, -k], axis=1)
    row_i = jnp.concatenate([i,  r, -k,  j], axis=1)
    row_j = jnp.concatenate([j,  k,  r, -i], axis=1)
    row_k = jnp.concatenate([k, -j,  i,  r], axis=1)
    return jnp.concatenate([row_r, row_i, row_j, row_k], axis=0)  # (out, in)


def _pick_tile(hw, max_tile=2048):
    """Largest pixel tile: full HW if it fits, else the biggest multiple-of-128
    divisor of HW not exceeding max_tile (falls back to full HW)."""
    if hw <= max_tile:
        return hw
    for t in range(max_tile - (max_tile % 128), 127, -128):
        if hw % t == 0:
            return t
    # TODO(synk): pad H*W to a multiple of 128 + mask the tail for ragged sizes.
    return hw


# ----------------------------------------------------------------------------
# Wrapper: NCHW consumed directly as (N, C, H*W); grid over (N, HW tiles).
# ----------------------------------------------------------------------------
def q_attention(g, x, wg, wx, wf, *, max_tile=2048):
    N, Cg, H, W = g.shape
    _, Cx, _, _ = x.shape
    Co = wg.shape[0]
    HW = H * W
    thw = _pick_tile(HW, max_tile)
    assert HW % thw == 0

    g3 = g.reshape(N, Cg, HW)   # free reshape, no transpose
    x3 = x.reshape(N, Cx, HW)

    out = pl.pallas_call(
        qatt_kernel,
        out_shape=jax.ShapeDtypeStruct((N, Cx, HW), x.dtype),
        grid_spec=pltpu.PrefetchScalarGridSpec(
            num_scalar_prefetch=0,
            grid=(N, HW // thw),
            in_specs=[
                pl.BlockSpec((None, Cg, thw), lambda n, t: (n, 0, t)),
                pl.BlockSpec((None, Cx, thw), lambda n, t: (n, 0, t)),
                pl.BlockSpec((Co, Cg), lambda n, t: (0, 0)),   # resident weights
                pl.BlockSpec((Co, Cx), lambda n, t: (0, 0)),
                pl.BlockSpec((4, Co), lambda n, t: (0, 0)),
            ],
            out_specs=pl.BlockSpec((None, Cx, thw), lambda n, t: (n, 0, t)),
        ),
        compiler_params=pltpu.CompilerParams(
            dimension_semantics=("parallel", "parallel")),
    )(g3, x3, wg, wx, wf)

    return out.reshape(N, Cx, H, W)


# Pure-JAX reference for verification
def q_attention_ref(g, x, wg, wx, wf):
    g1 = jnp.einsum("nchw,oc->nohw", g, wg)
    x1 = jnp.einsum("nchw,oc->nohw", x, wx)
    net = jnp.maximum(g1 + x1, 0.0)
    net = jnp.einsum("nchw,oc->nohw", net, wf)           # (N, 4, H, W)
    mod = jnp.sqrt(jnp.sum(net * net, axis=1, keepdims=True))
    att = jax.nn.sigmoid(mod)
    return att * x


if __name__ == "__main__":
    # Small shapes consistent with the module (channels divisible by 4).
    N, H, W = 2, 16, 16
    ch_ing, ch_inx, ch_out = 8, 8, 32

    key = jax.random.PRNGKey(0)
    kg, kx, kwg, kwx, kwf = jax.random.split(key, 5)

    g = jax.random.normal(kg, (N, ch_ing, H, W), jnp.float32)
    x = jax.random.normal(kx, (N, ch_inx, H, W), jnp.float32)

    wg = make_quaternion_weight(kwg, ch_out, ch_ing)   # convg weight (1x1)
    wx = make_quaternion_weight(kwx, ch_out, ch_inx)   # convx weight (1x1)
    wf = make_quaternion_weight(kwf, 4, ch_out)        # final conv weight (1x1)

    out = q_attention(g, x, wg, wx, wf)
    out = jax.block_until_ready(out)

    ref = jax.block_until_ready(q_attention_ref(g, x, wg, wx, wf))
    np.testing.assert_allclose(np.asarray(out), np.asarray(ref),
                               rtol=2e-5, atol=2e-5)

    print("KERNEL_OK")
</pallas_src>

<mosaic_0001>
module attributes {stable_mosaic.version = 11 : i64} {
  func.func @qatt_kernel(%arg0: i32, %arg1: i32, %arg2: memref<1x8x256xf32, #tpu.memory_space<vmem>>, %arg3: memref<1x8x256xf32, #tpu.memory_space<vmem>>, %arg4: memref<32x8xf32, #tpu.memory_space<vmem>>, %arg5: memref<32x8xf32, #tpu.memory_space<vmem>>, %arg6: memref<4x32xf32, #tpu.memory_space<vmem>>, %arg7: memref<1x8x256xf32, #tpu.memory_space<vmem>>) attributes {dimension_semantics = [#tpu.dimension_semantics<parallel>, #tpu.dimension_semantics<parallel>], iteration_bounds = array<i64: 2, 1>, scalar_prefetch = 0 : i64, scratch_operands = 0 : i64, tpu.core_type = #tpu.core_type<tc>, window_params = [{transform_indices = @transform_0, window_bounds = array<i64: 1, 8, 256>}, {transform_indices = @transform_1, window_bounds = array<i64: 1, 8, 256>}, {pipeline_mode = #tpu.pipeline_mode<synchronous>, transform_indices = @transform_2, window_bounds = array<i64: 32, 8>}, {pipeline_mode = #tpu.pipeline_mode<synchronous>, transform_indices = @transform_3, window_bounds = array<i64: 32, 8>}, {pipeline_mode = #tpu.pipeline_mode<synchronous>, transform_indices = @transform_4, window_bounds = array<i64: 4, 32>}, {transform_indices = @transform_5, window_bounds = array<i64: 1, 8, 256>}]} {
    %c0 = arith.constant 0 : index
    %c0_0 = arith.constant 0 : index
    %c0_1 = arith.constant 0 : index
    %0 = vector.load %arg2[%c0, %c0_0, %c0_1] : memref<1x8x256xf32, #tpu.memory_space<vmem>>, vector<1x8x256xf32>
    %1 = vector.shape_cast %0 : vector<1x8x256xf32> to vector<8x256xf32>
    %c0_2 = arith.constant 0 : index
    %c0_3 = arith.constant 0 : index
    %c0_4 = arith.constant 0 : index
    %2 = vector.load %arg3[%c0_2, %c0_3, %c0_4] : memref<1x8x256xf32, #tpu.memory_space<vmem>>, vector<1x8x256xf32>
    %3 = vector.shape_cast %2 : vector<1x8x256xf32> to vector<8x256xf32>
    %c0_5 = arith.constant 0 : index
    %c0_6 = arith.constant 0 : index
    %4 = vector.load %arg4[%c0_5, %c0_6] : memref<32x8xf32, #tpu.memory_space<vmem>>, vector<32x8xf32>
    %cst = arith.constant dense<0.000000e+00> : vector<32x256xf32>
    %5 = tpu.matmul %4, %1, %cst {dimension_numbers = #tpu.dot_dimension_numbers<[1], [0], [0], [1], [0, 0, 1, 1], [], []>} : vector<32x8xf32>, vector<8x256xf32>, vector<32x256xf32> -> vector<32x256xf32>
    %c0_7 = arith.constant 0 : index
    %c0_8 = arith.constant 0 : index
    %6 = vector.load %arg5[%c0_7, %c0_8] : memref<32x8xf32, #tpu.memory_space<vmem>>, vector<32x8xf32>
    %cst_9 = arith.constant dense<0.000000e+00> : vector<32x256xf32>
    %7 = tpu.matmul %6, %3, %cst_9 {dimension_numbers = #tpu.dot_dimension_numbers<[1], [0], [0], [1], [0, 0, 1, 1], [], []>} : vector<32x8xf32>, vector<8x256xf32>, vector<32x256xf32> -> vector<32x256xf32>
    %8 = arith.addf %5, %7 : vector<32x256xf32>
    %cst_10 = arith.constant 0.000000e+00 : f32
    %9 = vector.broadcast %cst_10 : f32 to vector<32x256xf32>
    %10 = arith.maximumf %8, %9 : vector<32x256xf32>
    %c0_11 = arith.constant 0 : index
    %c0_12 = arith.constant 0 : index
    %11 = vector.load %arg6[%c0_11, %c0_12] : memref<4x32xf32, #tpu.memory_space<vmem>>, vector<4x32xf32>
    %cst_13 = arith.constant dense<0.000000e+00> : vector<4x256xf32>
    %12 = tpu.matmul %11, %10, %cst_13 {dimension_numbers = #tpu.dot_dimension_numbers<[1], [0], [0], [1], [0, 0, 1, 1], [], []>} : vector<4x32xf32>, vector<32x256xf32>, vector<4x256xf32> -> vector<4x256xf32>
    %13 = arith.mulf %12, %12 : vector<4x256xf32>
    %14 = vector.extract_strided_slice %13 {offsets = [0, 0], sizes = [1, 256], strides = [1, 1]} : vector<4x256xf32> to vector<1x256xf32>
    %15 = vector.extract_strided_slice %13 {offsets = [1, 0], sizes = [1, 256], strides = [1, 1]} : vector<4x256xf32> to vector<1x256xf32>
    %16 = arith.addf %14, %15 : vector<1x256xf32>
    %17 = vector.extract_strided_slice %13 {offsets = [2, 0], sizes = [1, 256], strides = [1, 1]} : vector<4x256xf32> to vector<1x256xf32>
    %18 = arith.addf %16, %17 : vector<1x256xf32>
    %19 = vector.extract_strided_slice %13 {offsets = [3, 0], sizes = [1, 256], strides = [1, 1]} : vector<4x256xf32> to vector<1x256xf32>
    %20 = arith.addf %18, %19 : vector<1x256xf32>
    %21 = math.sqrt %20 : vector<1x256xf32>
    %22 = arith.negf %21 : vector<1x256xf32>
    %23 = math.exp %22 : vector<1x256xf32>
    %cst_14 = arith.constant 1.000000e+00 : f32
    %24 = vector.broadcast %cst_14 : f32 to vector<1x256xf32>
    %25 = arith.addf %24, %23 : vector<1x256xf32>
    %26 = arith.divf %24, %25 : vector<1x256xf32>
    %27 = vector.broadcast %26 : vector<1x256xf32> to vector<8x256xf32>
    %28 = arith.mulf %27, %3 : vector<8x256xf32>
    %c0_15 = arith.constant 0 : index
    %c0_16 = arith.constant 0 : index
    %c0_17 = arith.constant 0 : index
    %29 = vector.load %arg7[%c0_15, %c0_16, %c0_17] : memref<1x8x256xf32, #tpu.memory_space<vmem>>, vector<1x8x256xf32>
    %30 = vector.shape_cast %29 : vector<1x8x256xf32> to vector<8x256xf32>
    %31 = vector.shape_cast %28 : vector<8x256xf32> to vector<1x8x256xf32>
    tpu.vector_store %arg7[%c0_15, %c0_16, %c0_17], %31 {strides = array<i32>} : memref<1x8x256xf32, #tpu.memory_space<vmem>>, vector<1x8x256xf32>,
    return
  }
  func.func @transform_0(%arg0: i32, %arg1: i32) -> (i32, i32, i32) {
    %c0_i32 = arith.constant 0 : i32
    %c0_i32_0 = arith.constant 0 : i32
    return %arg0, %c0_i32, %arg1 : i32, i32, i32
  }
  func.func @transform_1(%arg0: i32, %arg1: i32) -> (i32, i32, i32) {
    %c0_i32 = arith.constant 0 : i32
    %c0_i32_0 = arith.constant 0 : i32
    return %arg0, %c0_i32, %arg1 : i32, i32, i32
  }
  func.func @transform_2(%arg0: i32, %arg1: i32) -> (i32, i32) {
    %c0_i32 = arith.constant 0 : i32
    %c0_i32_0 = arith.constant 0 : i32
    %c0_i32_1 = arith.constant 0 : i32
    return %c0_i32, %c0_i32_0 : i32, i32
  }
  func.func @transform_3(%arg0: i32, %arg1: i32) -> (i32, i32) {
    %c0_i32 = arith.constant 0 : i32
    %c0_i32_0 = arith.constant 0 : i32
    %c0_i32_1 = arith.constant 0 : i32
    return %c0_i32, %c0_i32_0 : i32, i32
  }
  func.func @transform_4(%arg0: i32, %arg1: i32) -> (i32, i32) {
    %c0_i32 = arith.constant 0 : i32
    %c0_i32_0 = arith.constant 0 : i32
    %c0_i32_1 = arith.constant 0 : i32
    return %c0_i32, %c0_i32_0 : i32, i32
  }
  func.func @transform_5(%arg0: i32, %arg1: i32) -> (i32, i32, i32) {
    %c0_i32 = arith.constant 0 : i32
    %c0_i32_0 = arith.constant 0 : i32
    return %arg0, %c0_i32, %arg1 : i32, i32, i32
  }
}

</mosaic_0001>

<bundles_post_ra>
// kernel: tpu_custom_call.1
= control target key start
LH: loop header
LB: loop body
LE: loop exit
PB: predicated region body
PF: predicated region fallthrough
CT: control target
= control target key end

     0   :  { %10 = vsyncpa [#allocation3], 0  ;;  %s1069_s0 = inlined_call_operand.vmem [shape: f32[2,8,256], index: 0, kind: input, shape index: {}]   ;;  %s1070_s1 = inlined_call_operand.vmem [shape: f32[2,8,256], index: 1, kind: input, shape index: {}]   ;;  %s1071_s2 = inlined_call_operand.vmem [shape: f32[32,8], index: 2, kind: input, shape index: {}]   ;;  %s1072_s3 = inlined_call_operand.vmem [shape: f32[32,8], index: 3, kind: input, shape index: {}]   ;;  %s1073_s4 = inlined_call_operand.vmem [shape: f32[4,32], index: 4, kind: input, shape index: {}]   ;;  %s1074_s5 = inlined_call_operand.hbm [shape: f32[2,8,256], index: 5, kind: output, shape index: {}]  }
   0x1   :  { %12 = vsyncpa [#allocation3 + $0x1], 0  ;;  %s914_s18 = smov 0   ;;  %s916_s19 = smov 0  }
   0x2   :  { %s918_s20 = smov 0   ;;  %s920_s21 = smov 0  }
   0x3   :  { %s922_s22 = smov 0   ;;  %s924_s23 = smov 0  }
   0x4 LB: > { %s699_s24 = sadd.s32 4294967295, %s882_s23   ;;  %s700_s25 = sadd.s32 4294967294, %s882_s23   ;;  %s882_s23 = sphi %s924_s23, %s18_s23   ;;  %s878_s22 = sphi %s922_s22, %s1081_s22   ;;  %s874_s21 = sphi %s920_s21, %s1080_s21   ;;  %s870_s20 = sphi %s918_s20, %s1079_s20   ;;  %s866_s19 = sphi %s916_s19, %s1078_s19   ;;  %s862_s18 = sphi %s914_s18, %s1077_s18  }
   0x5   : > { %s30_s26 = sadd.s32 1, %s878_s22  ;;  %s158_s27 = sadd.s32 1, %s870_s20 }
   0x6   : > { %p32_p0 = scmp.ge.s32.totalorder %s30_s26, 2  ;;  %p168_p1 = scmp.ne.s32.totalorder %s870_s20, %s866_s19 }
   0x7   : > { %p169_p2 = scmp.eq.s32.totalorder %s699_s24, 1  ;;  %p174_p3 = scmp.ne.s32.totalorder %s866_s19, %s862_s18 }
   0x8   : > { %s1083_s26 = smov (%p32_p0, %s30_s26), 0  ;;  %p175_p5 = scmp.eq.s32.totalorder %s700_s25, 1 }
   0x9   : > { %p954_p4 = por %p169_p2, %p168_p1  ;;  %s153_s29 = ssub.s32 %s878_s22, %s1083_s26 }
   0xa   : > { %p703_p6 = scmp.ge.s32.totalorder %s882_s23, 1  ;;  %p156_p7 = scmp.eq.s32.totalorder %s153_s29, 0 }
   0xb   : > { %p961_p8 = por %p175_p5, %p174_p3  ;;  %p228_p9 = scmp.lt.s32.totalorder %s882_s23, 3 }
   0xc   : > { %s967_s6 = scalar_select %p156_p7, %s870_s20, %s158_s27  }
   0xd   : > { %p229_p10 = pnand %p703_p6, %p228_p9 }
   0xe   : > { %p270_p11 = scmp.lt.s32.totalorder (!%p229_p10), %s874_s21, 1  ;;  %s266_s24 = sand.u32 (!%p229_p10), 1, %s866_s19  }
   0xf   : > { %232 = sbr.rel (%p229_p10) target bundleno = 386 (0x182), region = 40  ;;  %s704_s25 = sshll.u32 (!%p229_p10), %s266_s24, 4 }
  0x10   : > { %s736_s27 = sshll.u32 (!%p229_p10), %s874_s21, 4 }
  0x14   : > { %s271_s7 = scalar_select %p270_p11, %s874_s21, 1  ;;  %v294_v0 = vld [vmem:[%s1071_s2] sm:$0xff]  ;;  %vm302_vm0 = vcmask 64512   ;;  %v295_v6 = vld [vmem:[%s1071_s2 + $0x8] sm:$0xff]  ;;  %v296_v8 = vld [vmem:[%s1071_s2 + $0x10] sm:$0xff]  ;;  %vm452_vm1 = vcmask 261120  }
  0x15   : > { %v298_v5 = vld [vmem:[%s1072_s3] sm:$0xff]  ;;  %v299_v7 = vld [vmem:[%s1072_s3 + $0x8] sm:$0xff]  ;;  %v300_v9 = vld [vmem:[%s1072_s3 + $0x10] sm:$0xff]  ;;  %s268_s21 = scalar_lea.vmem [#allocation2], %s704_s25 }
  0x16   : > { %s734_s8 = sshll.u32 %s271_s7, 4  ;;  %v297_v10 = vld [vmem:[%s1071_s2 + $0x18] sm:$0xff]  ;;  %v451_v44 = vld [vmem:[%s1073_s4] sm:$0xf]  ;;  %s602_s9 = sshll.u32 %s268_s21, 4  ;;  %s603_s9 = int_to_ptr.vmem [resolvable:$true] %s602_s9 }
  0x17   : > { %s277_s11 = scalar_lea.vmem %s1069_s0, %s734_s8  ;;  %s287_s16 = scalar_lea.vmem %s1070_s1, %s734_s8  ;;  %v301_v11 = vld [vmem:[%s1072_s3 + $0x18] sm:$0xff] }
  0x18   : > { %v290_v1 = vld [vmem:[%s277_s11] sm:$0xff]  ;;  %v291_v2 = vld [vmem:[%s277_s11 + $0x8] sm:$0xff]  ;;  %s600_s8 = scalar_lea.hbm %s1074_s5, %s736_s27  ;;  %s587_s11 = scalar_lea.sflag [#allocation3], %s266_s24 }
  0x19   : > { %v980_v3 = vld [vmem:[%s287_s16] sm:$0xff]  ;;  %400 = vmatpush.msra.mxu2 %v290_v1  ;;  %429 = vmatpush.msra.mxu3 %v291_v2  ;;  %v982_v4 = vld [vmem:[%s287_s16 + $0x8] sm:$0xff]  ;;  %s604_s10 = sshll.u32 %s600_s8, 4  ;;  %s824_s16 = scalar_lea.hbm %s1074_s5, 32  ;;  %s605_s10 = int_to_ptr.hbm [resolvable:$true] %s604_s10 }
  0x1a   : > { %717 = vmatmul.msk.f32.vlgmr.msra.gmra.mxu2 %vm302_vm0, %v294_v0  ;;  %721 = vmatmul.msk.f32.vlgmr.msra.gmra.mxu3 %vm302_vm0, %v294_v0  ;;  %s818_s12 = sshra.s32 %s605_s10, 4  ;;  %s819_s12 = int_to_ptr.hbm [resolvable:$true] %s818_s12 }
  0x1b   : > { %330 = vmatpush.msra.mxu0 %v980_v3  ;;  %359 = vmatpush.msra.mxu1 %v982_v4  ;;  %s820_s13 = scalar_lea.hbm %s819_s12, 16  ;;  %p825_p1 = scmp.lt.s32.totalorder %s819_s12, %s1074_s5 }
  0x1c   : > { %709 = vmatmul.msk.f32.vlgmr.msra.gmra.mxu0 %vm302_vm0, %v298_v5  ;;  %713 = vmatmul.msk.f32.vlgmr.msra.gmra.mxu1 %vm302_vm0, %v298_v5  ;;  %p821_p12 = scmp.ne.s32.totalorder %s819_s12, %s820_s13  ;;  %p826_p2 = scmp.lt.s32.totalorder %s824_s16, %s820_s13 }
  0x1e   : > { %p822_p13 = pnand %p821_p12, %p954_p4  ;;  %p827_p3 = por %p826_p2, %p825_p1 }
  0x20   : > { %p823_p0 = pneg %p822_p13 }
  0x22   : > { %718 = vmatmul.msk.f32.gmra.mxu2 %vm302_vm0, %v295_v6  ;;  %722 = vmatmul.msk.f32.gmra.mxu3 %vm302_vm0, %v295_v6  ;;  %p828_p5 = pnand %p827_p3, %p823_p0 }
  0x24   : > { %710 = vmatmul.msk.f32.gmra.mxu0 %vm302_vm0, %v299_v7  ;;  %714 = vmatmul.msk.f32.gmra.mxu1 %vm302_vm0, %v299_v7 }
  0x2a   : > { %719 = vmatmul.msk.f32.gmra.mxu2 %vm302_vm0, %v296_v8  ;;  %723 = vmatmul.msk.f32.gmra.mxu3 %vm302_vm0, %v296_v8 }
  0x2c   : > { %711 = vmatmul.msk.f32.gmra.mxu0 %vm302_vm0, %v300_v9  ;;  %715 = vmatmul.msk.f32.gmra.mxu1 %vm302_vm0, %v300_v9 }
  0x32   : > { %720 = vmatmul.msk.f32.gmra.mxu2 %vm302_vm0, %v297_v10  ;;  %724 = vmatmul.msk.f32.gmra.mxu3 %vm302_vm0, %v297_v10 }
  0x34   : > { %712 = vmatmul.msk.f32.gmra.mxu0 %vm302_vm0, %v301_v11  ;;  %716 = vmatmul.msk.f32.gmra.mxu1 %vm302_vm0, %v301_v11 }
  0x99   : > { %v332_v12 = vpop.f32.mrf.mxu0  ;;  %v361_v13 = vpop.f32.mrf.mxu1 }
  0x9d   : > { %v402_v14 = vpop.f32.mrf.mxu2  ;;  %v431_v15 = vpop.f32.mrf.mxu3 }
  0x9e   : > { %v403_v36 = vadd.f32 %v402_v14, %v332_v12  ;;  %v432_v37 = vadd.f32 %v431_v15, %v361_v13 }
  0xa0   : > { %v443_v42 = vmax.f32 %v403_v36, 0.0  ;;  %v444_v43 = vmax.f32 %v432_v37, 0.0 }
  0xa1   : > { %v335_v16 = vpop.f32.mrf.mxu0  ;;  %v364_v17 = vpop.f32.mrf.mxu1 }
  0xa5   : > { %v405_v18 = vpop.f32.mrf.mxu2  ;;  %v434_v19 = vpop.f32.mrf.mxu3 }
  0xa6   : > { %v406_v32 = vadd.f32 %v405_v18, %v335_v16  ;;  %v435_v33 = vadd.f32 %v434_v19, %v364_v17 }
  0xa8   : > { %v445_v40 = vmax.f32 %v406_v32, 0.0  ;;  %v446_v41 = vmax.f32 %v435_v33, 0.0 }
  0xa9   : > { %v338_v20 = vpop.f32.mrf.mxu0  ;;  %v367_v21 = vpop.f32.mrf.mxu1 }
  0xad   : > { %v408_v22 = vpop.f32.mrf.mxu2  ;;  %v437_v23 = vpop.f32.mrf.mxu3 }
  0xae   : > { %v409_v28 = vadd.f32 %v408_v22, %v338_v20  ;;  %v438_v29 = vadd.f32 %v437_v23, %v367_v21 }
  0xb0   : > { %v447_v38 = vmax.f32 %v409_v28, 0.0  ;;  %v448_v39 = vmax.f32 %v438_v29, 0.0 }
  0xb1   : > { %v341_v24 = vpop.f32.mrf.mxu0  ;;  %v370_v25 = vpop.f32.mrf.mxu1 }
  0xb5   : > { %v411_v26 = vpop.f32.mrf.mxu2  ;;  %v440_v27 = vpop.f32.mrf.mxu3 }
  0xb6   : > { %v412_v30 = vadd.f32 %v411_v26, %v341_v24  ;;  %v441_v31 = vadd.f32 %v440_v27, %v370_v25 }
  0xb8   : > { %v449_v34 = vmax.f32 %v412_v30, 0.0  ;;  %v450_v35 = vmax.f32 %v441_v31, 0.0 }
  0xba   : > { %468 = vmatpush.msrb.mxu0 %v449_v34  ;;  %488 = vmatpush.msrb.mxu1 %v450_v35 }
  0xbc   : > { %469 = vmatpush.msrb.mxu0 %v447_v38  ;;  %489 = vmatpush.msrb.mxu1 %v448_v39 }
  0xbe   : > { %470 = vmatpush.msrb.mxu0 %v445_v40  ;;  %490 = vmatpush.msrb.mxu1 %v446_v41 }
  0xc0   : > { %471 = vmatpush.msrb.mxu0 %v443_v42  ;;  %491 = vmatpush.msrb.mxu1 %v444_v43 }
  0xc1   : > { %725 = vmatmul.msk.f32.vlgmr.msrb.gmra.mxu0 %vm452_vm1, %v451_v44  ;;  %726 = vmatmul.msk.f32.vlgmr.msrb.gmra.mxu1 %vm452_vm1, %v451_v44 }
 0x13e   : > { %v473_v45 = vpop.f32.mrf.mxu0  ;;  %v493_v46 = vpop.f32.mrf.mxu1 }
 0x13f   : > { %v496_v47 = vmul.f32 %v473_v45, %v473_v45  ;;  %v497_v48 = vmul.f32 %v493_v46, %v493_v46 }
 0x141   : > { %v500_v49 = vrot.slane %v496_v47, 1  ;;  %v501_v50 = vrot.slane %v497_v48, 1  ;;  %v506_v52 = vrot.slane %v496_v47, 2  ;;  %v507_v54 = vrot.slane %v497_v48, 2 }
 0x142   : > { %v512_v56 = vrot.slane %v496_v47, 3  ;;  %v513_v58 = vrot.slane %v497_v48, 3 }
 0x143   : > { %v504_v51 = vadd.f32 %v500_v49, %v496_v47  ;;  %v505_v53 = vadd.f32 %v501_v50, %v497_v48 }
 0x145   : > { %v510_v55 = vadd.f32 %v506_v52, %v504_v51  ;;  %v511_v57 = vadd.f32 %v507_v54, %v505_v53 }
 0x147   : > { %v516_v59 = vadd.f32 %v512_v56, %v510_v55  ;;  %v517_v60 = vadd.f32 %v513_v58, %v511_v57 }
 0x149   : > { %792 = vrsqrt.f32 %v516_v59  ;;  %vm525_vm2 = vcmp.eq.f32.partialorder %v516_v59, inf  ;;  %v528_v13 = vand.u32 2147483648, %v516_v59  ;;  %vm527_vm3 = vcmp.eq.f32.partialorder %v516_v59, 0.0 }
 0x14a   : > { %794 = vrsqrt.f32 %v517_v60  ;;  %vm537_vm4 = vcmp.eq.f32.partialorder %v517_v60, inf  ;;  %v540_v15 = vand.u32 2147483648, %v517_v60  ;;  %vm539_vm5 = vcmp.eq.f32.partialorder %v517_v60, 0.0 }
 0x14f   : > { %v793_v61 = vpop.eup %792 }
 0x150   : > { %v795_v62 = vpop.eup %794  ;;  %v519_v63 = vmul.f32 %v793_v61, %v516_v59 }
 0x151   : > { %v531_v0 = vmul.f32 %v795_v62, %v517_v60 }
 0x152   : > { %v520_v1 = vmul.f32 %v793_v61, %v519_v63 }
 0x153   : > { %v532_v2 = vmul.f32 %v795_v62, %v531_v0 }
 0x154   : > { %v521_v5 = vmul.f32 0.5, %v520_v1 }
 0x155   : > { %v533_v6 = vmul.f32 0.5, %v532_v2 }
 0x156   : > { %v522_v7 = vsub.f32 1.5, %v521_v5 }
 0x157   : > { %v534_v8 = vsub.f32 1.5, %v533_v6 }
 0x158   : > { %v523_v9 = vmul.f32 %v793_v61, %v522_v7 }
 0x159   : > { %v535_v10 = vmul.f32 %v795_v62, %v534_v8 }
 0x15a   : > { %v524_v11 = vmul.f32 %v523_v9, %v516_v59 }
 0x15b   : > { %v536_v12 = vmul.f32 %v535_v10, %v517_v60 }
 0x15c   : > { %v526_v14 = vsel %vm525_vm2, %v516_v59, %v524_v11 }
 0x15d   : > { %v529_v16 = vsel %vm527_vm3, %v528_v13, %v526_v14  ;;  %v538_v17 = vsel %vm537_vm4, %v517_v60, %v536_v12 }
 0x15e   : > { %v541_v18 = vsel %vm539_vm5, %v540_v15, %v538_v17  ;;  %v727_v19 = vmul.f32 -1.442695, %v529_v16 }
 0x15f   : > { %v728_v20 = vmul.f32 -1.442695, %v541_v18 }
 0x160   : > { %796 = vpow2.f32 %v727_v19 }
 0x161   : > { %798 = vpow2.f32 %v728_v20 }
 0x166   : > { %v797_v21 = vpop.eup %796 }
 0x167   : > { %v799_v22 = vpop.eup %798  ;;  %v548_v23 = vadd.f32 1.0, %v797_v21 }
 0x168   : > { %v549_v24 = vadd.f32 1.0, %v799_v22 }
 0x169   : > { %800 = vrcp.f32 %v548_v23  ;;  %v561_v30 = vand.u32 2147483648, %v548_v23  ;;  %v559_v33 = vand.u32 2147483647, %v548_v23  ;;  %vm555_vm8 = vweird.f32 %v548_v23 }
 0x16a   : > { %802 = vrcp.f32 %v549_v24  ;;  %v576_v34 = vand.u32 2147483648, %v549_v24  ;;  %v574_v36 = vand.u32 2147483647, %v549_v24  ;;  %vm570_vm10 = vweird.f32 %v549_v24 }
 0x16b   : > { %v562_v38 = vor.u32 1.1754944e-38, %v561_v30  ;;  %vm560_vm11 = vcmp.eq.f32.partialorder %v559_v33, 8.507059e+37 }
 0x16c   : > { %v577_v41 = vor.u32 1.1754944e-38, %v576_v34  ;;  %vm575_vm13 = vcmp.eq.f32.partialorder %v574_v36, 8.507059e+37 }
 0x16f   : > { %v801_v25 = vpop.eup %800 }
 0x170   : > { %v803_v26 = vpop.eup %802  ;;  %v551_v27 = vmul.f32 %v801_v25, %v548_v23  ;;  %vm556_vm6 = vweird.f32 %v801_v25 }
 0x171   : > { %v566_v28 = vmul.f32 %v803_v26, %v549_v24  ;;  %vm571_vm7 = vweird.f32 %v803_v26  ;;  %vm557_vm9 = vmor %vm555_vm8, %vm556_vm6 }
 0x172   : > { %v552_v29 = vsub.f32 1.0, %v551_v27  ;;  %vm572_vm12 = vmor %vm570_vm10, %vm571_vm7 }
 0x173   : > { %v567_v31 = vsub.f32 1.0, %v566_v28 }
 0x174   : > { %v553_v32 = vmul.f32 %v801_v25, %v552_v29 }
 0x175   : > { %v568_v35 = vmul.f32 %v803_v26, %v567_v31 }
 0x176   : > { %v554_v37 = vadd.f32 %v801_v25, %v553_v32 }
 0x177   : > { %v569_v39 = vadd.f32 %v803_v26, %v568_v35 }
 0x178   : > { %v558_v40 = vsel %vm557_vm9, %v801_v25, %v554_v37 }
 0x179   : > { %v563_v42 = vsel %vm560_vm11, %v562_v38, %v558_v40  ;;  %v573_v43 = vsel %vm572_vm12, %v803_v26, %v569_v39 }
 0x17a   : > { %v578_v44 = vsel %vm575_vm13, %v577_v41, %v573_v43  ;;  %v580_v45 = vperm.slane %v563_v42, 0 }
 0x17b   : > { %v581_v46 = vperm.slane %v578_v44, 0 }
 0x17c   : > { %v582_v47 = vmul.f32 %v580_v45, %v980_v3 }
 0x17d   : > { %v583_v48 = vmul.f32 %v581_v46, %v982_v4 }
 0x17e   : > { %584 = vst [vmem:[%s268_s21] sm:$0xff] %v582_v47 }
 0x17f   : > { %585 = vst [vmem:[%s268_s21 + $0x8] sm:$0xff] %v583_v48 }
 0x180   : > { %831 = shalt.err (!%p828_p5)
}
 0x181   : > { %737 = dma.vmem_to_hbm [thread:$0]  (%p954_p4), %s603_s9, 256, %s605_s10, %s587_s11  }
 0x182 PF: > { %p743_p6 = scmp.ge.s32.totalorder %s882_s23, 2  ;;  %s616_s24 = sand.u32 1, %s862_s18  }
 0x183   : > { %s617_s27 = scalar_lea.sflag [#allocation3], %s616_s24 }
 0x184   : > { %p740_p7 = pnand %p743_p6, %p961_p8 }
 0x186   : > { %p741_p9 = pneg %p740_p7 }
 0x188   : > { %857 = dma.done.wait (%p741_p9), %s617_s27, 256  }
 0x189   : > { %859 = vsyncadd (%p741_p9), %s617_s27, 4294967040  ;;  %s18_s23 = sadd.s32 1, %s882_s23   ;;  %s1077_s18 = smov %s866_s19 }
 0x18a   : > { %p15_p10 = scmp.ge.s32.totalorder %s18_s23, 4   ;;  %s1078_s19 = smov %s870_s20 }
 0x18b   : > { %s1079_s20 = smov %s967_s6  ;;  %s1080_s21 = smov %s878_s22 }
 0x18c   : > { %s1081_s22 = smov %s1083_s26  ;;  %17 = sbr.rel (!%p15_p10) target bundleno = 4 (0x4), region = 78 }
 0x191   :  { %623 = vsyncpa [#allocation3], 1 }
 0x192   :  { %625 = vsyncpa [#allocation3 + $0x1], 1 }

</bundles_post_ra>
